<compile_context>
chip_gen: v6e
topology: v6e:2x2x1
jax: 0.10.0
libtpu: 0.0.40
codegen_flags: <defaults>
</compile_context>

<pallas_src>
import jax
import jax.numpy as jnp
from jax import lax
from jax.experimental import pallas as pl
from jax.experimental.pallas import tpu as pltpu


def _make_rnn_kernel(seq, batch):
    def kernel(tok_ref,     # (seq*B, 1)  int32 tokens, row order = t*B + b
               h0_ref,      # (B, Hp)     f32 initial hidden state (zero-padded)
               wih_ref,     # (V, Hp)     W_ih^T (zero-padded columns)
               whh_ref,     # (Hp, Hp)    W_hh^T (zero-padded rows/cols)
               bh_ref,      # (1, Hp)     b_ih + b_hh (zero-padded)
               wout_ref,    # (Hp, V)     W_out^T (zero-padded rows)
               bout_ref,    # (1, V)      b_out
               out_ref,     # (seq*B, V)  output rows, lane-dense
               state_ref,   # (B, Hp)     final hidden state (padded)
               y_ref):      # VMEM scratch (seq*B, Hp) f32: Z then H per row block
        sb, vocab = out_ref.shape

        # --- Input projection for ALL time steps at once (one MXU matmul). ---
        tok = tok_ref[...]                                              # (seq*B, 1)
        one_hot = (tok == lax.broadcasted_iota(jnp.int32, (sb, vocab), 1)
                   ).astype(jnp.float32)
        y_ref[...] = (jnp.dot(one_hot, wih_ref[...],
                              preferred_element_type=jnp.float32)
                      + bh_ref[...])

        # --- Sequential recurrence, fully unrolled; the carry lives in vregs. ---
        whh = whh_ref[...]
        h = h0_ref[...]
        for t in range(seq):                      # static bounds -> static slices
            rows = pl.ds(t * batch, batch)
            h = jnp.tanh(y_ref[rows, :]
                         + jnp.dot(h, whh, preferred_element_type=jnp.float32))
            y_ref[rows, :] = h

        # --- Output Linear fused over the whole sequence; one lane-dense store. ---
        out_ref[...] = (jnp.dot(y_ref[...], wout_ref[...],
                                preferred_element_type=jnp.float32)
                        + bout_ref[...]).astype(out_ref.dtype)
        state_ref[...] = h.astype(state_ref.dtype)

    return kernel


def rnn_model_forward(inputs, state, w_ih, w_hh, b_ih, b_hh, w_out, b_out):
    """Fused RNNModel forward.

    inputs: (batch, seq) int32 tokens; state: (1, batch, hidden) f32.
    Weights in PyTorch nn.RNN / nn.Linear layout:
      w_ih (H, V), w_hh (H, H), b_ih (H,), b_hh (H,), w_out (V, H), b_out (V,).
    Returns (output (seq*batch, vocab) f32, state (1, batch, hidden) f32).
    """
    batch, seq = inputs.shape
    hidden, vocab = w_ih.shape
    hp = ((hidden + 127) // 128) * 128    # lane-dense hidden; padded lanes stay 0

    f32 = jnp.float32
    wih_p = jnp.zeros((vocab, hp), f32).at[:, :hidden].set(w_ih.T.astype(f32))
    whh_p = jnp.zeros((hp, hp), f32).at[:hidden, :hidden].set(w_hh.T.astype(f32))
    bh_p = jnp.zeros((1, hp), f32).at[0, :hidden].set((b_ih + b_hh).astype(f32))
    wout_p = jnp.zeros((hp, vocab), f32).at[:hidden, :].set(w_out.T.astype(f32))
    bout_p = b_out.reshape(1, vocab).astype(f32)
    h0_p = jnp.zeros((batch, hp), f32).at[:, :hidden].set(state[0].astype(f32))

    # inputs.T flattened so row t*batch + b matches the PyTorch output row order.
    tokens = jnp.transpose(inputs).reshape(seq * batch, 1).astype(jnp.int32)

    vmem_spec = pl.BlockSpec(memory_space=pltpu.MemorySpace.VMEM)
    out, state_p = pl.pallas_call(
        _make_rnn_kernel(seq, batch),
        out_shape=(jax.ShapeDtypeStruct((seq * batch, vocab), jnp.float32),
                   jax.ShapeDtypeStruct((batch, hp), jnp.float32)),
        in_specs=[vmem_spec] * 7,
        out_specs=(vmem_spec, vmem_spec),
        scratch_shapes=[pltpu.VMEM((seq * batch, hp), jnp.float32)],
        compiler_params=pltpu.CompilerParams(
            vmem_limit_bytes=16 * 1024 * 1024,   # tiny working set; valid on all gens
        ),
    )(tokens, h0_p, wih_p, whh_p, bh_p, wout_p, bout_p)

    return out, state_p[:, :hidden][None]


def _reference(inputs, h0, w_ih, w_hh, b_ih, b_hh, w_out, b_out):
    vocab = w_ih.shape[1]
    X = jax.nn.one_hot(inputs.T, vocab, dtype=jnp.float32)       # (seq, batch, vocab)

    def step(h, x):
        h_new = jnp.tanh(x @ w_ih.T + b_ih + h @ w_hh.T + b_hh)
        return h_new, h_new

    h_final, Y = lax.scan(step, h0[0], X)
    out = Y.reshape(-1, Y.shape[-1]) @ w_out.T + b_out
    return out, h_final[None]


# TODO(synk): only the canonical single-layer, unidirectional, tanh nn.RNN path of
# RNNModel is implemented; multi-layer / bidirectional / LSTM / GRU rnn_layer
# variants are not translated.

if __name__ == "__main__":
    key = jax.random.PRNGKey(0)

    batch, seq = 8, 10
    vocab_size, num_hiddens = 128, 32   # vocab multiple of 128 -> lane-dense output

    k1, k2, k3, k4, k5, k6, k7, k8 = jax.random.split(key, 8)
    inputs = jax.random.randint(k1, (batch, seq), 0, vocab_size, dtype=jnp.int32)
    h0 = jax.random.normal(k2, (1, batch, num_hiddens), dtype=jnp.float32)

    # nn.RNN / nn.Linear default init: U(-1/sqrt(H), 1/sqrt(H)); PyTorch layout.
    bound = 1.0 / (num_hiddens ** 0.5)
    w_ih = jax.random.uniform(k3, (num_hiddens, vocab_size), jnp.float32, -bound, bound)
    w_hh = jax.random.uniform(k4, (num_hiddens, num_hiddens), jnp.float32, -bound, bound)
    b_ih = jax.random.uniform(k5, (num_hiddens,), jnp.float32, -bound, bound)
    b_hh = jax.random.uniform(k6, (num_hiddens,), jnp.float32, -bound, bound)
    w_out = jax.random.uniform(k7, (vocab_size, num_hiddens), jnp.float32, -bound, bound)
    b_out = jax.random.uniform(k8, (vocab_size,), jnp.float32, -bound, bound)

    out, state = rnn_model_forward(inputs, h0, w_ih, w_hh, b_ih, b_hh, w_out, b_out)
    out, state = jax.block_until_ready((out, state))

    ref_out, ref_state = _reference(inputs, h0, w_ih, w_hh, b_ih, b_hh, w_out, b_out)
    assert out.shape == (seq * batch, vocab_size)
    assert state.shape == (1, batch, num_hiddens)
    assert jnp.allclose(out, ref_out, atol=1e-4, rtol=1e-4), "output mismatch vs reference"
    assert jnp.allclose(state, ref_state, atol=1e-4, rtol=1e-4), "state mismatch vs reference"

    print("KERNEL_OK")
</pallas_src>

<mosaic_0001>
module attributes {stable_mosaic.version = 11 : i64} {
  func.func @kernel(%arg0: memref<80x1xi32, #tpu.memory_space<vmem>>, %arg1: memref<8x128xf32, #tpu.memory_space<vmem>>, %arg2: memref<128x128xf32, #tpu.memory_space<vmem>>, %arg3: memref<128x128xf32, #tpu.memory_space<vmem>>, %arg4: memref<1x128xf32, #tpu.memory_space<vmem>>, %arg5: memref<128x128xf32, #tpu.memory_space<vmem>>, %arg6: memref<1x128xf32, #tpu.memory_space<vmem>>, %arg7: memref<80x128xf32, #tpu.memory_space<vmem>>, %arg8: memref<8x128xf32, #tpu.memory_space<vmem>>, %arg9: memref<80x128xf32, #tpu.memory_space<vmem>>) attributes {dimension_semantics = [], scalar_prefetch = 0 : i64, scratch_operands = 1 : i64, tpu.core_type = #tpu.core_type<tc>} {
    %c0 = arith.constant 0 : index
    %c0_0 = arith.constant 0 : index
    %0 = vector.load %arg0[%c0, %c0_0] : memref<80x1xi32, #tpu.memory_space<vmem>>, vector<80x1xi32>
    %1 = tpu.iota {dimensions = array<i32: 1>} : vector<80x128xi32>
    %2 = vector.broadcast %0 : vector<80x1xi32> to vector<80x128xi32>
    %3 = arith.cmpi eq, %2, %1 : vector<80x128xi32>
    %4 = arith.extui %3 : vector<80x128xi1> to vector<80x128xi32>
    %5 = arith.sitofp %4 : vector<80x128xi32> to vector<80x128xf32>
    %c0_1 = arith.constant 0 : index
    %c0_2 = arith.constant 0 : index
    %6 = vector.load %arg2[%c0_1, %c0_2] : memref<128x128xf32, #tpu.memory_space<vmem>>, vector<128x128xf32>
    %cst = arith.constant dense<0.000000e+00> : vector<80x128xf32>
    %7 = tpu.matmul %5, %6, %cst {dimension_numbers = #tpu.dot_dimension_numbers<[1], [0], [0], [1], [0, 0, 1, 1], [], []>} : vector<80x128xf32>, vector<128x128xf32>, vector<80x128xf32> -> vector<80x128xf32>
    %c0_3 = arith.constant 0 : index
    %c0_4 = arith.constant 0 : index
    %8 = vector.load %arg4[%c0_3, %c0_4] : memref<1x128xf32, #tpu.memory_space<vmem>>, vector<1x128xf32>
    %9 = vector.broadcast %8 : vector<1x128xf32> to vector<80x128xf32>
    %10 = arith.addf %7, %9 : vector<80x128xf32>
    %c0_5 = arith.constant 0 : index
    %c0_6 = arith.constant 0 : index
    %11 = vector.load %arg9[%c0_5, %c0_6] : memref<80x128xf32, #tpu.memory_space<vmem>>, vector<80x128xf32>
    tpu.vector_store %arg9[%c0_5, %c0_6], %10 {strides = array<i32>} : memref<80x128xf32, #tpu.memory_space<vmem>>, vector<80x128xf32>,
    %c0_7 = arith.constant 0 : index
    %c0_8 = arith.constant 0 : index
    %12 = vector.load %arg3[%c0_7, %c0_8] : memref<128x128xf32, #tpu.memory_space<vmem>>, vector<128x128xf32>
    %c0_9 = arith.constant 0 : index
    %c0_10 = arith.constant 0 : index
    %13 = vector.load %arg1[%c0_9, %c0_10] : memref<8x128xf32, #tpu.memory_space<vmem>>, vector<8x128xf32>
    %c0_11 = arith.constant 0 : index
    %c0_12 = arith.constant 0 : index
    %14 = vector.load %arg9[%c0_11, %c0_12] : memref<80x128xf32, #tpu.memory_space<vmem>>, vector<8x128xf32>
    %cst_13 = arith.constant dense<0.000000e+00> : vector<8x128xf32>
    %15 = tpu.matmul %13, %12, %cst_13 {dimension_numbers = #tpu.dot_dimension_numbers<[1], [0], [0], [1], [0, 0, 1, 1], [], []>} : vector<8x128xf32>, vector<128x128xf32>, vector<8x128xf32> -> vector<8x128xf32>
    %16 = arith.addf %14, %15 : vector<8x128xf32>
    %17 = math.tanh %16 : vector<8x128xf32>
    %c0_14 = arith.constant 0 : index
    %c0_15 = arith.constant 0 : index
    %18 = vector.load %arg9[%c0_14, %c0_15] : memref<80x128xf32, #tpu.memory_space<vmem>>, vector<8x128xf32>
    tpu.vector_store %arg9[%c0_14, %c0_15], %17 {strides = array<i32>} : memref<80x128xf32, #tpu.memory_space<vmem>>, vector<8x128xf32>,
    %c8 = arith.constant 8 : index
    %c0_16 = arith.constant 0 : index
    %19 = vector.load %arg9[%c8, %c0_16] : memref<80x128xf32, #tpu.memory_space<vmem>>, vector<8x128xf32>
    %cst_17 = arith.constant dense<0.000000e+00> : vector<8x128xf32>
    %20 = tpu.matmul %17, %12, %cst_17 {dimension_numbers = #tpu.dot_dimension_numbers<[1], [0], [0], [1], [0, 0, 1, 1], [], []>} : vector<8x128xf32>, vector<128x128xf32>, vector<8x128xf32> -> vector<8x128xf32>
    %21 = arith.addf %19, %20 : vector<8x128xf32>
    %22 = math.tanh %21 : vector<8x128xf32>
    %c8_18 = arith.constant 8 : index
    %c0_19 = arith.constant 0 : index
    %23 = vector.load %arg9[%c8_18, %c0_19] : memref<80x128xf32, #tpu.memory_space<vmem>>, vector<8x128xf32>
    tpu.vector_store %arg9[%c8_18, %c0_19], %22 {strides = array<i32>} : memref<80x128xf32, #tpu.memory_space<vmem>>, vector<8x128xf32>,
    %c16 = arith.constant 16 : index
    %c0_20 = arith.constant 0 : index
    %24 = vector.load %arg9[%c16, %c0_20] : memref<80x128xf32, #tpu.memory_space<vmem>>, vector<8x128xf32>
    %cst_21 = arith.constant dense<0.000000e+00> : vector<8x128xf32>
    %25 = tpu.matmul %22, %12, %cst_21 {dimension_numbers = #tpu.dot_dimension_numbers<[1], [0], [0], [1], [0, 0, 1, 1], [], []>} : vector<8x128xf32>, vector<128x128xf32>, vector<8x128xf32> -> vector<8x128xf32>
    %26 = arith.addf %24, %25 : vector<8x128xf32>
    %27 = math.tanh %26 : vector<8x128xf32>
    %c16_22 = arith.constant 16 : index
    %c0_23 = arith.constant 0 : index
    %28 = vector.load %arg9[%c16_22, %c0_23] : memref<80x128xf32, #tpu.memory_space<vmem>>, vector<8x128xf32>
    tpu.vector_store %arg9[%c16_22, %c0_23], %27 {strides = array<i32>} : memref<80x128xf32, #tpu.memory_space<vmem>>, vector<8x128xf32>,
    %c24 = arith.constant 24 : index
    %c0_24 = arith.constant 0 : index
    %29 = vector.load %arg9[%c24, %c0_24] : memref<80x128xf32, #tpu.memory_space<vmem>>, vector<8x128xf32>
    %cst_25 = arith.constant dense<0.000000e+00> : vector<8x128xf32>
    %30 = tpu.matmul %27, %12, %cst_25 {dimension_numbers = #tpu.dot_dimension_numbers<[1], [0], [0], [1], [0, 0, 1, 1], [], []>} : vector<8x128xf32>, vector<128x128xf32>, vector<8x128xf32> -> vector<8x128xf32>
    %31 = arith.addf %29, %30 : vector<8x128xf32>
    %32 = math.tanh %31 : vector<8x128xf32>
    %c24_26 = arith.constant 24 : index
    %c0_27 = arith.constant 0 : index
    %33 = vector.load %arg9[%c24_26, %c0_27] : memref<80x128xf32, #tpu.memory_space<vmem>>, vector<8x128xf32>
    tpu.vector_store %arg9[%c24_26, %c0_27], %32 {strides = array<i32>} : memref<80x128xf32, #tpu.memory_space<vmem>>, vector<8x128xf32>,
    %c32 = arith.constant 32 : index
    %c0_28 = arith.constant 0 : index
    %34 = vector.load %arg9[%c32, %c0_28] : memref<80x128xf32, #tpu.memory_space<vmem>>, vector<8x128xf32>
    %cst_29 = arith.constant dense<0.000000e+00> : vector<8x128xf32>
    %35 = tpu.matmul %32, %12, %cst_29 {dimension_numbers = #tpu.dot_dimension_numbers<[1], [0], [0], [1], [0, 0, 1, 1], [], []>} : vector<8x128xf32>, vector<128x128xf32>, vector<8x128xf32> -> vector<8x128xf32>
    %36 = arith.addf %34, %35 : vector<8x128xf32>
    %37 = math.tanh %36 : vector<8x128xf32>
    %c32_30 = arith.constant 32 : index
    %c0_31 = arith.constant 0 : index
    %38 = vector.load %arg9[%c32_30, %c0_31] : memref<80x128xf32, #tpu.memory_space<vmem>>, vector<8x128xf32>
    tpu.vector_store %arg9[%c32_30, %c0_31], %37 {strides = array<i32>} : memref<80x128xf32, #tpu.memory_space<vmem>>, vector<8x128xf32>,
    %c40 = arith.constant 40 : index
    %c0_32 = arith.constant 0 : index
    %39 = vector.load %arg9[%c40, %c0_32] : memref<80x128xf32, #tpu.memory_space<vmem>>, vector<8x128xf32>
    %cst_33 = arith.constant dense<0.000000e+00> : vector<8x128xf32>
    %40 = tpu.matmul %37, %12, %cst_33 {dimension_numbers = #tpu.dot_dimension_numbers<[1], [0], [0], [1], [0, 0, 1, 1], [], []>} : vector<8x128xf32>, vector<128x128xf32>, vector<8x128xf32> -> vector<8x128xf32>
    %41 = arith.addf %39, %40 : vector<8x128xf32>
    %42 = math.tanh %41 : vector<8x128xf32>
    %c40_34 = arith.constant 40 : index
    %c0_35 = arith.constant 0 : index
    %43 = vector.load %arg9[%c40_34, %c0_35] : memref<80x128xf32, #tpu.memory_space<vmem>>, vector<8x128xf32>
    tpu.vector_store %arg9[%c40_34, %c0_35], %42 {strides = array<i32>} : memref<80x128xf32, #tpu.memory_space<vmem>>, vector<8x128xf32>,
    %c48 = arith.constant 48 : index
    %c0_36 = arith.constant 0 : index
    %44 = vector.load %arg9[%c48, %c0_36] : memref<80x128xf32, #tpu.memory_space<vmem>>, vector<8x128xf32>
    %cst_37 = arith.constant dense<0.000000e+00> : vector<8x128xf32>
    %45 = tpu.matmul %42, %12, %cst_37 {dimension_numbers = #tpu.dot_dimension_numbers<[1], [0], [0], [1], [0, 0, 1, 1], [], []>} : vector<8x128xf32>, vector<128x128xf32>, vector<8x128xf32> -> vector<8x128xf32>
    %46 = arith.addf %44, %45 : vector<8x128xf32>
    %47 = math.tanh %46 : vector<8x128xf32>
    %c48_38 = arith.constant 48 : index
    %c0_39 = arith.constant 0 : index
    %48 = vector.load %arg9[%c48_38, %c0_39] : memref<80x128xf32, #tpu.memory_space<vmem>>, vector<8x128xf32>
    tpu.vector_store %arg9[%c48_38, %c0_39], %47 {strides = array<i32>} : memref<80x128xf32, #tpu.memory_space<vmem>>, vector<8x128xf32>,
    %c56 = arith.constant 56 : index
    %c0_40 = arith.constant 0 : index
    %49 = vector.load %arg9[%c56, %c0_40] : memref<80x128xf32, #tpu.memory_space<vmem>>, vector<8x128xf32>
    %cst_41 = arith.constant dense<0.000000e+00> : vector<8x128xf32>
    %50 = tpu.matmul %47, %12, %cst_41 {dimension_numbers = #tpu.dot_dimension_numbers<[1], [0], [0], [1], [0, 0, 1, 1], [], []>} : vector<8x128xf32>, vector<128x128xf32>, vector<8x128xf32> -> vector<8x128xf32>
    %51 = arith.addf %49, %50 : vector<8x128xf32>
    %52 = math.tanh %51 : vector<8x128xf32>
    %c56_42 = arith.constant 56 : index
    %c0_43 = arith.constant 0 : index
    %53 = vector.load %arg9[%c56_42, %c0_43] : memref<80x128xf32, #tpu.memory_space<vmem>>, vector<8x128xf32>
    tpu.vector_store %arg9[%c56_42, %c0_43], %52 {strides = array<i32>} : memref<80x128xf32, #tpu.memory_space<vmem>>, vector<8x128xf32>,
    %c64 = arith.constant 64 : index
    %c0_44 = arith.constant 0 : index
    %54 = vector.load %arg9[%c64, %c0_44] : memref<80x128xf32, #tpu.memory_space<vmem>>, vector<8x128xf32>
    %cst_45 = arith.constant dense<0.000000e+00> : vector<8x128xf32>
    %55 = tpu.matmul %52, %12, %cst_45 {dimension_numbers = #tpu.dot_dimension_numbers<[1], [0], [0], [1], [0, 0, 1, 1], [], []>} : vector<8x128xf32>, vector<128x128xf32>, vector<8x128xf32> -> vector<8x128xf32>
    %56 = arith.addf %54, %55 : vector<8x128xf32>
    %57 = math.tanh %56 : vector<8x128xf32>
    %c64_46 = arith.constant 64 : index
    %c0_47 = arith.constant 0 : index
    %58 = vector.load %arg9[%c64_46, %c0_47] : memref<80x128xf32, #tpu.memory_space<vmem>>, vector<8x128xf32>
    tpu.vector_store %arg9[%c64_46, %c0_47], %57 {strides = array<i32>} : memref<80x128xf32, #tpu.memory_space<vmem>>, vector<8x128xf32>,
    %c72 = arith.constant 72 : index
    %c0_48 = arith.constant 0 : index
    %59 = vector.load %arg9[%c72, %c0_48] : memref<80x128xf32, #tpu.memory_space<vmem>>, vector<8x128xf32>
    %cst_49 = arith.constant dense<0.000000e+00> : vector<8x128xf32>
    %60 = tpu.matmul %57, %12, %cst_49 {dimension_numbers = #tpu.dot_dimension_numbers<[1], [0], [0], [1], [0, 0, 1, 1], [], []>} : vector<8x128xf32>, vector<128x128xf32>, vector<8x128xf32> -> vector<8x128xf32>
    %61 = arith.addf %59, %60 : vector<8x128xf32>
    %62 = math.tanh %61 : vector<8x128xf32>
    %c72_50 = arith.constant 72 : index
    %c0_51 = arith.constant 0 : index
    %63 = vector.load %arg9[%c72_50, %c0_51] : memref<80x128xf32, #tpu.memory_space<vmem>>, vector<8x128xf32>
    tpu.vector_store %arg9[%c72_50, %c0_51], %62 {strides = array<i32>} : memref<80x128xf32, #tpu.memory_space<vmem>>, vector<8x128xf32>,
    %c0_52 = arith.constant 0 : index
    %c0_53 = arith.constant 0 : index
    %64 = vector.load %arg9[%c0_52, %c0_53] : memref<80x128xf32, #tpu.memory_space<vmem>>, vector<80x128xf32>
    %c0_54 = arith.constant 0 : index
    %c0_55 = arith.constant 0 : index
    %65 = vector.load %arg5[%c0_54, %c0_55] : memref<128x128xf32, #tpu.memory_space<vmem>>, vector<128x128xf32>
    %cst_56 = arith.constant dense<0.000000e+00> : vector<80x128xf32>
    %66 = tpu.matmul %64, %65, %cst_56 {dimension_numbers = #tpu.dot_dimension_numbers<[1], [0], [0], [1], [0, 0, 1, 1], [], []>} : vector<80x128xf32>, vector<128x128xf32>, vector<80x128xf32> -> vector<80x128xf32>
    %c0_57 = arith.constant 0 : index
    %c0_58 = arith.constant 0 : index
    %67 = vector.load %arg6[%c0_57, %c0_58] : memref<1x128xf32, #tpu.memory_space<vmem>>, vector<1x128xf32>
    %68 = vector.broadcast %67 : vector<1x128xf32> to vector<80x128xf32>
    %69 = arith.addf %66, %68 : vector<80x128xf32>
    %c0_59 = arith.constant 0 : index
    %c0_60 = arith.constant 0 : index
    %70 = vector.load %arg7[%c0_59, %c0_60] : memref<80x128xf32, #tpu.memory_space<vmem>>, vector<80x128xf32>
    tpu.vector_store %arg7[%c0_59, %c0_60], %69 {strides = array<i32>} : memref<80x128xf32, #tpu.memory_space<vmem>>, vector<80x128xf32>,
    %c0_61 = arith.constant 0 : index
    %c0_62 = arith.constant 0 : index
    %71 = vector.load %arg8[%c0_61, %c0_62] : memref<8x128xf32, #tpu.memory_space<vmem>>, vector<8x128xf32>
    tpu.vector_store %arg8[%c0_61, %c0_62], %62 {strides = array<i32>} : memref<8x128xf32, #tpu.memory_space<vmem>>, vector<8x128xf32>,
    return
  }
}

</mosaic_0001>

<bundles_post_ra>
// kernel: tpu_custom_call.1
= control target key start
LH: loop header
LB: loop body
LE: loop exit
PB: predicated region body
PF: predicated region fallthrough
CT: control target
= control target key end

     0   :  { %14 = vsyncpa [#allocation4], 0  ;;  %s2638_s0 = inlined_call_operand.vmem [shape: s32[80,1], index: 0, kind: input, shape index: {}]   ;;  %s2639_s1 = inlined_call_operand.vmem [shape: f32[8,128], index: 1, kind: input, shape index: {}]   ;;  %s2640_s2 = inlined_call_operand.hbm [shape: f32[128,128], index: 2, kind: input, shape index: {}]   ;;  %s2641_s3 = inlined_call_operand.hbm [shape: f32[128,128], index: 3, kind: input, shape index: {}]   ;;  %s2642_s4 = inlined_call_operand.vmem [shape: f32[1,128], index: 4, kind: input, shape index: {}]   ;;  %s2643_s5 = inlined_call_operand.hbm [shape: f32[128,128], index: 5, kind: input, shape index: {}]   ;;  %s2644_s6 = inlined_call_operand.vmem [shape: f32[1,128], index: 6, kind: input, shape index: {}]   ;;  %s2645_s7 = inlined_call_operand.hbm [shape: f32[80,128], index: 7, kind: output, shape index: {0}]   ;;  %s2646_s8 = inlined_call_operand.hbm [shape: f32[8,128], index: 8, kind: output, shape index: {1}]  }
   0x1   :  { %15 = vsyncpa [#allocation7], 0 }
   0x2   :  { %16 = vsyncpa [#allocation5], 0 }
   0x3   :  { %17 = vsyncpa [#allocation11], 0  ;;  %s2068_s27 = smov [#allocation6]   ;;  %s2069_s29 = smov [#allocation3]  }
   0x4   :  { %s39_s28 = sshll.u32 %s2068_s27, 4  ;;  %s27_s30 = sshll.u32 %s2069_s29, 4  ;;  %s40_s28 = int_to_ptr.vmem [resolvable:$true] %s39_s28  ;;  %s28_s30 = int_to_ptr.vmem [resolvable:$true] %s27_s30 }
   0x5   :  { %s1968_s9 = scalar_lea.vmem %s40_s28, 2048  ;;  %p1973_p1 = scmp.lt.s32.totalorder %s40_s28, %s40_s28 }
   0x6   :  { %p1969_p0 = scmp.ne.s32.totalorder %s40_s28, %s1968_s9  ;;  %p1974_p2 = scmp.lt.s32.totalorder %s1968_s9, %s1968_s9 }
   0x8   :  { %p1975_p3 = por %p1974_p2, %p1973_p1 }
   0xa   :  { %p1976_p4 = pnand %p1975_p3, %p1969_p0 }
   0xc   :  { %1979 = shalt.err (!%p1976_p4)
}
   0xd   :  { %s2070_s10 = smov 128   ;;  %s2071_s11 = smov 8  }
   0xe   :  { %45 = dma.hbm_to_vmem [thread:$0]  %s2641_s3, 2048, %s40_s28, [#allocation7], %s2070_s10, %s2070_s10, %s2071_s11  }
   0xf   :  { %s1988_s14 = scalar_lea.vmem %s28_s30, 2048  ;;  %p1993_p6 = scmp.lt.s32.totalorder %s28_s30, %s28_s30 }
  0x10   :  { %p1989_p5 = scmp.ne.s32.totalorder %s28_s30, %s1988_s14  ;;  %p1994_p7 = scmp.lt.s32.totalorder %s1988_s14, %s1988_s14 }
  0x12   :  { %p1995_p8 = por %p1994_p7, %p1993_p6 }
  0x14   :  { %p1996_p9 = pnand %p1995_p8, %p1989_p5 }
  0x16   :  { %1999 = shalt.err (!%p1996_p9)
}
  0x17   :  { %33 = dma.hbm_to_vmem [thread:$0]  %s2640_s2, 2048, %s28_s30, [#allocation4], %s2070_s10, %s2070_s10, %s2071_s11  }
  0x18   :  { %s2072_s17 = smov [#allocation8]  }
  0x19   :  { %s53_s18 = sshll.u32 %s2072_s17, 4  ;;  %s54_s18 = int_to_ptr.vmem [resolvable:$true] %s53_s18 }
  0x1a   :  { %s2008_s19 = scalar_lea.vmem %s54_s18, 2048  ;;  %p2013_p11 = scmp.lt.s32.totalorder %s54_s18, %s54_s18 }
  0x1b   :  { %p2009_p10 = scmp.ne.s32.totalorder %s54_s18, %s2008_s19  ;;  %p2014_p12 = scmp.lt.s32.totalorder %s2008_s19, %s2008_s19 }
  0x1d   :  { %p2015_p13 = por %p2014_p12, %p2013_p11 }
  0x1f   :  { %p2016_p0 = pnand %p2015_p13, %p2009_p10 }
  0x21   :  { %2019 = shalt.err (!%p2016_p0)
}
  0x22   :  { %59 = dma.hbm_to_vmem [thread:$0]  %s2643_s5, 2048, %s54_s18, [#allocation7], %s2070_s10, %s2070_s10, %s2071_s11  }
  0x23   :  { %2060 = dma.done.wait [#allocation4], 2048  }
  0x24   :  { %2061 = vsyncadd [#allocation4], 4294965248 }
  0x25   :  { %2062 = dma.done.wait [#allocation7], 4096  }
  0x26   :  { %2063 = vsyncadd [#allocation7], 4294963200  ;;  %v2073_v0 = vmov 0   ;;  %v2074_v1 = vmov 0.0   ;;  %v71_v2 = vld [vmem:[%s2638_s0] sm:$0xff]  ;;  %v73_v3 = vld [vmem:[%s2638_s0 + $0x10] sm:$0xff]  ;;  %v81_v45 = vlaneseq }
  0x27   :  { %1938 = vset.pattern.permute.xlu0 %v2073_v0  ;;  %1939 = vset.pattern.permute.xlu1 %v2073_v0  ;;  %v72_v4 = vld [vmem:[%s2638_s0 + $0x8] sm:$0xff]  ;;  %v74_v5 = vld [vmem:[%s2638_s0 + $0x18] sm:$0xff]  ;;  %vm2075_vm0 = vmmov 0   ;;  %v157_v8 = vld [vmem:[#allocation3 + $0x70] sm:$0xff]  ;;  %v2076_v49 = vmov 1.0  }
  0x28   :  { %1530 = vmatprep.subr.mxu1 %v2074_v1  ;;  %84 = vperm.xlu0 %1938, %v71_v2   ;;  %v158_v6 = vld [vmem:[#allocation3 + $0x78] sm:$0xff]  ;;  %v2160_v9 = vld [vmem:[#allocation6 + $0x70] sm:$0xff]  ;;  %v75_v10 = vld [vmem:[%s2638_s0 + $0x20] sm:$0xff]  ;;  %v2277_v46 = vand.u32 127, %v81_v45 }
  0x29   :  { %90 = vperm.xlu1 %1939, %v73_v3   ;;  %v2155_v7 = vld [vmem:[#allocation6 + $0x78] sm:$0xff]  ;;  %1562 = vmatprep.mubr.msk.f32.mxu1 %vm2075_vm0, %v2074_v1  ;;  %v76_v11 = vld [vmem:[%s2638_s0 + $0x28] sm:$0xff]  ;;  %v155_v14 = vld [vmem:[#allocation3 + $0x60] sm:$0xff] }
  0x2a   :  { %1483 = vmatprep.subr.mxu0 %v158_v6  ;;  %1531 = vmatpush3.msra.mxu1 %v2155_v7  ;;  %v156_v12 = vld [vmem:[#allocation3 + $0x68] sm:$0xff]  ;;  %v2173_v15 = vld [vmem:[#allocation6 + $0x60] sm:$0xff]  ;;  %v77_v16 = vld [vmem:[%s2638_s0 + $0x30] sm:$0xff] }
  0x2b   :  { %1484 = vmatpush3.msra.mxu0 %v158_v6  ;;  %1532 = vmatprep.subr.mxu1 %v2074_v1  ;;  %v2170_v13 = vld [vmem:[#allocation6 + $0x68] sm:$0xff]  ;;  %v78_v17 = vld [vmem:[%s2638_s0 + $0x38] sm:$0xff]  ;;  %v79_v20 = vld [vmem:[%s2638_s0 + $0x40] sm:$0xff] }
  0x2c   :  { %87 = vperm.xlu0 %1938, %v72_v4   ;;  %1485 = vmatprep.subr.mxu0 %v157_v8  ;;  %v154_v18 = vld [vmem:[#allocation3 + $0x58] sm:$0xff]  ;;  %v153_v21 = vld [vmem:[#allocation3 + $0x50] sm:$0xff]  ;;  %v152_v23 = vld [vmem:[#allocation3 + $0x48] sm:$0xff] }
  0x2d   :  { %93 = vperm.xlu1 %1939, %v74_v5   ;;  %1533 = vmatpush3.msra.mxu1 %v2160_v9  ;;  %v2184_v19 = vld [vmem:[#allocation6 + $0x58] sm:$0xff]  ;;  %v2191_v22 = vld [vmem:[#allocation6 + $0x50] sm:$0xff]  ;;  %v2194_v24 = vld [vmem:[#allocation6 + $0x48] sm:$0xff] }
  0x2e   :  { %1486 = vmatpush3.msra.mxu0 %v157_v8  ;;  %1534 = vmatprep.subr.mxu1 %v2074_v1  ;;  %v151_v25 = vld [vmem:[#allocation3 + $0x40] sm:$0xff]  ;;  %v150_v27 = vld [vmem:[#allocation3 + $0x38] sm:$0xff]  ;;  %v149_v29 = vld [vmem:[#allocation3 + $0x30] sm:$0xff] }
  0x2f   :  { %1487 = vmatprep.subr.mxu0 %v156_v12  ;;  %1535 = vmatpush3.msra.mxu1 %v2170_v13  ;;  %v2198_v26 = vld [vmem:[#allocation6 + $0x40] sm:$0xff]  ;;  %v2202_v28 = vld [vmem:[#allocation6 + $0x38] sm:$0xff]  ;;  %v2206_v30 = vld [vmem:[#allocation6 + $0x30] sm:$0xff] }
  0x30   :  { %96 = vperm.xlu0 %1938, %v75_v10   ;;  %1488 = vmatpush3.msra.mxu0 %v156_v12  ;;  %v148_v31 = vld [vmem:[#allocation3 + $0x28] sm:$0xff]  ;;  %v147_v33 = vld [vmem:[#allocation3 + $0x20] sm:$0xff]  ;;  %v146_v35 = vld [vmem:[#allocation3 + $0x18] sm:$0xff] }
  0x31   :  { %99 = vperm.xlu1 %1939, %v76_v11   ;;  %1536 = vmatprep.subr.mxu1 %v2074_v1  ;;  %v2210_v32 = vld [vmem:[#allocation6 + $0x28] sm:$0xff]  ;;  %v2214_v34 = vld [vmem:[#allocation6 + $0x20] sm:$0xff]  ;;  %v2218_v36 = vld [vmem:[#allocation6 + $0x18] sm:$0xff] }
  0x32   :  { %1489 = vmatprep.subr.mxu0 %v155_v14  ;;  %1537 = vmatpush3.msra.mxu1 %v2173_v15  ;;  %v145_v37 = vld [vmem:[#allocation3 + $0x10] sm:$0xff]  ;;  %v144_v39 = vld [vmem:[#allocation3 + $0x8] sm:$0xff]  ;;  %v143_v41 = vld [vmem:[#allocation3] sm:$0xff] }
  0x33   :  { %1490 = vmatpush3.msra.mxu0 %v155_v14  ;;  %1538 = vmatprep.subr.mxu1 %v2074_v1  ;;  %v2222_v38 = vld [vmem:[#allocation6 + $0x10] sm:$0xff]  ;;  %v2226_v40 = vld [vmem:[#allocation6 + $0x8] sm:$0xff]  ;;  %v2230_v42 = vld [vmem:[#allocation6] sm:$0xff] }
  0x34   :  { %102 = vperm.xlu0 %1938, %v77_v16   ;;  %1491 = vmatprep.subr.mxu0 %v154_v18  ;;  %v307_v43 = vld [vmem:[%s2639_s1] sm:$0xff]  ;;  %v80_v44 = vld [vmem:[%s2638_s0 + $0x48] sm:$0xff] }
  0x35   :  { %105 = vperm.xlu1 %1939, %v78_v17   ;;  %1539 = vmatpush3.msra.mxu1 %v2184_v19  ;;  %v2326_v60 = vld [vmem:[%s2642_s4] ss:$0 sm:$0xff] }
  0x36   :  { %1492 = vmatpush3.msra.mxu0 %v154_v18  ;;  %1540 = vmatprep.subr.mxu1 %v2074_v1 }
  0x37   :  { %1493 = vmatprep.subr.mxu0 %v153_v21  ;;  %1541 = vmatpush3.msra.mxu1 %v2191_v22 }
  0x38   :  { %108 = vperm.xlu0 %1938, %v79_v20   ;;  %1494 = vmatpush3.msra.mxu0 %v153_v21 }
  0x39   :  { %1495 = vmatprep.subr.mxu0 %v152_v23  ;;  %1542 = vmatprep.subr.mxu1 %v2074_v1 }
  0x3a   :  { %1496 = vmatpush3.msra.mxu0 %v152_v23  ;;  %1543 = vmatpush3.msra.mxu1 %v2194_v24 }
  0x3b   :  { %1497 = vmatprep.subr.mxu0 %v151_v25  ;;  %1544 = vmatprep.subr.mxu1 %v2074_v1 }
  0x3c   :  { %1498 = vmatpush3.msra.mxu0 %v151_v25  ;;  %1545 = vmatpush3.msra.mxu1 %v2198_v26 }
  0x3d   :  { %1499 = vmatprep.subr.mxu0 %v150_v27  ;;  %1546 = vmatprep.subr.mxu1 %v2074_v1 }
  0x3e   :  { %1500 = vmatpush3.msra.mxu0 %v150_v27  ;;  %1547 = vmatpush3.msra.mxu1 %v2202_v28 }
  0x3f   :  { %1501 = vmatprep.subr.mxu0 %v149_v29  ;;  %1548 = vmatprep.subr.mxu1 %v2074_v1 }
  0x40   :  { %1502 = vmatpush3.msra.mxu0 %v149_v29  ;;  %1549 = vmatpush3.msra.mxu1 %v2206_v30 }
  0x41   :  { %1503 = vmatprep.subr.mxu0 %v148_v31  ;;  %1550 = vmatprep.subr.mxu1 %v2074_v1 }
  0x42   :  { %1504 = vmatpush3.msra.mxu0 %v148_v31  ;;  %1551 = vmatpush3.msra.mxu1 %v2210_v32 }
  0x43   :  { %1505 = vmatprep.subr.mxu0 %v147_v33  ;;  %1552 = vmatprep.subr.mxu1 %v2074_v1 }
  0x44   :  { %1506 = vmatpush3.msra.mxu0 %v147_v33  ;;  %1553 = vmatpush3.msra.mxu1 %v2214_v34 }
  0x45   :  { %1507 = vmatprep.subr.mxu0 %v146_v35  ;;  %1554 = vmatprep.subr.mxu1 %v2074_v1 }
  0x46   :  { %1508 = vmatpush3.msra.mxu0 %v146_v35  ;;  %1555 = vmatpush3.msra.mxu1 %v2218_v36 }
  0x47   :  { %1509 = vmatprep.subr.mxu0 %v145_v37  ;;  %1556 = vmatprep.subr.mxu1 %v2074_v1 }
  0x48   :  { %1510 = vmatpush3.msra.mxu0 %v145_v37  ;;  %1557 = vmatpush3.msra.mxu1 %v2222_v38 }
  0x49   :  { %1511 = vmatprep.subr.mxu0 %v144_v39  ;;  %1558 = vmatprep.subr.mxu1 %v2074_v1 }
  0x4a   :  { %1512 = vmatpush3.msra.mxu0 %v144_v39  ;;  %1559 = vmatpush3.msra.mxu1 %v2226_v40 }
  0x4b   :  { %1513 = vmatprep.subr.mxu0 %v143_v41  ;;  %1560 = vmatprep.subr.mxu1 %v2074_v1 }
  0x4c   :  { %1514 = vmatpush3.msra.mxu0 %v143_v41  ;;  %1561 = vmatpush3.msra.mxu1 %v2230_v42 }
  0x4d   :  { %1563 = vmatmul.mubr.f32.vlgmr.msra.gmra.mxu1 %v307_v43  ;;  %111 = vperm.xlu1 %1939, %v80_v44  }
  0x4e   :  { %1565 = vmatprep.subr.mxu0 %v2074_v1  ;;  %1600 = vmatprep.subr.mxu1 %v2074_v1 }
  0x4f   :  { %1601 = vmatpush3.msra.mxu1 %v2155_v7  ;;  %1632 = vmatprep.mubr.msk.f32.mxu1 %vm2075_vm0, %v2074_v1 }
  0x50   :  { %1602 = vmatprep.subr.mxu1 %v2074_v1 }
  0x51   :  { %1603 = vmatpush3.msra.mxu1 %v2160_v9 }
  0x52   :  { %1604 = vmatprep.subr.mxu1 %v2074_v1 }
  0x53   :  { %1605 = vmatpush3.msra.mxu1 %v2170_v13 }
  0x54   :  { %1606 = vmatprep.subr.mxu1 %v2074_v1 }
  0x55   :  { %1607 = vmatpush3.msra.mxu1 %v2173_v15 }
  0x56   :  { %1608 = vmatprep.subr.mxu1 %v2074_v1 }
  0x57   :  { %1609 = vmatpush3.msra.mxu1 %v2184_v19 }
  0x58   :  { %1610 = vmatprep.subr.mxu1 %v2074_v1 }
  0x59   :  { %1611 = vmatpush3.msra.mxu1 %v2191_v22 }
  0x5a   :  { %1612 = vmatprep.subr.mxu1 %v2074_v1 }
  0x5b   :  { %1613 = vmatpush3.msra.mxu1 %v2194_v24 }
  0x5c   :  { %1614 = vmatprep.subr.mxu1 %v2074_v1 }
  0x5d   :  { %1615 = vmatpush3.msra.mxu1 %v2198_v26 }
  0x5e   :  { %1616 = vmatprep.subr.mxu1 %v2074_v1 }
  0x5f   :  { %1617 = vmatpush3.msra.mxu1 %v2202_v28 }
  0x60   :  { %1618 = vmatprep.subr.mxu1 %v2074_v1 }
  0x61   :  { %1619 = vmatpush3.msra.mxu1 %v2206_v30 }
  0x62   :  { %1620 = vmatprep.subr.mxu1 %v2074_v1 }
  0x63   :  { %1621 = vmatpush3.msra.mxu1 %v2210_v32 }
  0x64   :  { %1622 = vmatprep.subr.mxu1 %v2074_v1 }
  0x65   :  { %1623 = vmatpush3.msra.mxu1 %v2214_v34 }
  0x66   :  { %1624 = vmatprep.subr.mxu1 %v2074_v1 }
  0x67   :  { %1625 = vmatpush3.msra.mxu1 %v2218_v36 }
  0x68   :  { %1626 = vmatprep.subr.mxu1 %v2074_v1 }
  0x69   :  { %1627 = vmatpush3.msra.mxu1 %v2222_v38 }
  0x6a   :  { %1628 = vmatprep.subr.mxu1 %v2074_v1 }
  0x6b   :  { %1629 = vmatpush3.msra.mxu1 %v2226_v40 }
  0x6c   :  { %1630 = vmatprep.subr.mxu1 %v2074_v1 }
  0x6d   :  { %1631 = vmatpush3.msra.mxu1 %v2230_v42 }
  0x6e   :  { %1670 = vmatprep.subr.mxu1 %v2074_v1 }
  0xa3   :  { %v85_v47 = vpop.permute.xlu0 %84 }
  0xa4   :  { %v91_v48 = vpop.permute.xlu1 %90  ;;  %vm113_vm1 = vcmp.eq.s32.totalorder %v85_v47, %v2277_v46 }
  0xa5   :  { %1515 = vmatprep.mubr.msk.f32.mxu0 %vm113_vm1, %v2076_v49  ;;  %vm115_vm2 = vcmp.eq.s32.totalorder %v91_v48, %v2277_v46 }
  0xa7   :  { %v88_v50 = vpop.permute.xlu0 %87 }
  0xa8   :  { %v94_v51 = vpop.permute.xlu1 %93  ;;  %vm114_vm3 = vcmp.eq.s32.totalorder %v88_v50, %v2277_v46 }
  0xa9   :  { %1516 = vmatmul.mubr.msk.f32.vlgmr.msra.gmra.mxu0 %vm114_vm3, %v2076_v49  ;;  %vm116_vm4 = vcmp.eq.s32.totalorder %v94_v51, %v2277_v46 }
  0xaa   :  { %1518 = vmatprep.mubr.msk.f32.mxu0 %vm115_vm2, %v2076_v49  ;;  %1566 = vmatpush3.msra.mxu0 %v2155_v7 }
  0xab   :  { %v97_v52 = vpop.permute.xlu0 %96  ;;  %1567 = vmatprep.subr.mxu0 %v2074_v1 }
  0xac   :  { %v100_v53 = vpop.permute.xlu1 %99  ;;  %vm117_vm5 = vcmp.eq.s32.totalorder %v97_v52, %v2277_v46  ;;  %1568 = vmatpush3.msra.mxu0 %v2160_v9 }
  0xad   :  { %1519 = vmatmul.mubr.msk.f32.gmra.mxu0 %vm116_vm4, %v2076_v49  ;;  %1569 = vmatprep.subr.mxu0 %v2074_v1  ;;  %vm118_vm6 = vcmp.eq.s32.totalorder %v100_v53, %v2277_v46 }
  0xae   :  { %1521 = vmatprep.mubr.msk.f32.mxu0 %vm117_vm5, %v2076_v49  ;;  %1570 = vmatpush3.msra.mxu0 %v2170_v13 }
  0xaf   :  { %v103_v54 = vpop.permute.xlu0 %102  ;;  %1571 = vmatprep.subr.mxu0 %v2074_v1 }
  0xb0   :  { %v106_v55 = vpop.permute.xlu1 %105  ;;  %vm119_vm7 = vcmp.eq.s32.totalorder %v103_v54, %v2277_v46  ;;  %1572 = vmatpush3.msra.mxu0 %v2173_v15 }
  0xb1   :  { %1522 = vmatmul.mubr.msk.f32.gmra.mxu0 %vm118_vm6, %v2076_v49  ;;  %1573 = vmatprep.subr.mxu0 %v2074_v1  ;;  %vm120_vm8 = vcmp.eq.s32.totalorder %v106_v55, %v2277_v46 }
  0xb2   :  { %1524 = vmatprep.mubr.msk.f32.mxu0 %vm119_vm7, %v2076_v49  ;;  %1574 = vmatpush3.msra.mxu0 %v2184_v19 }
  0xb3   :  { %v109_v56 = vpop.permute.xlu0 %108  ;;  %1575 = vmatprep.subr.mxu0 %v2074_v1 }
  0xb4   :  { %vm121_vm9 = vcmp.eq.s32.totalorder %v109_v56, %v2277_v46  ;;  %1576 = vmatpush3.msra.mxu0 %v2191_v22 }
  0xb5   :  { %1525 = vmatmul.mubr.msk.f32.gmra.mxu0 %vm120_vm8, %v2076_v49  ;;  %1577 = vmatprep.subr.mxu0 %v2074_v1 }
  0xb6   :  { %1527 = vmatprep.mubr.msk.f32.mxu0 %vm121_vm9, %v2076_v49  ;;  %1578 = vmatpush3.msra.mxu0 %v2194_v24 }
  0xb7   :  { %1579 = vmatprep.subr.mxu0 %v2074_v1 }
  0xb8   :  { %1580 = vmatpush3.msra.mxu0 %v2198_v26 }
  0xb9   :  { %1581 = vmatprep.subr.mxu0 %v2074_v1 }
  0xba   :  { %1582 = vmatpush3.msra.mxu0 %v2202_v28 }
  0xbb   :  { %1583 = vmatprep.subr.mxu0 %v2074_v1 }
  0xbc   :  { %1584 = vmatpush3.msra.mxu0 %v2206_v30 }
  0xbd   :  { %1585 = vmatprep.subr.mxu0 %v2074_v1 }
  0xbe   :  { %1586 = vmatpush3.msra.mxu0 %v2210_v32 }
  0xbf   :  { %1587 = vmatprep.subr.mxu0 %v2074_v1 }
  0xc0   :  { %1588 = vmatpush3.msra.mxu0 %v2214_v34 }
  0xc1   :  { %1589 = vmatprep.subr.mxu0 %v2074_v1 }
  0xc2   :  { %1590 = vmatpush3.msra.mxu0 %v2218_v36 }
  0xc3   :  { %1591 = vmatprep.subr.mxu0 %v2074_v1 }
  0xc4   :  { %1592 = vmatpush3.msra.mxu0 %v2222_v38 }
  0xc5   :  { %1593 = vmatprep.subr.mxu0 %v2074_v1 }
  0xc6   :  { %1594 = vmatpush3.msra.mxu0 %v2226_v40 }
  0xc7   :  { %1595 = vmatprep.subr.mxu0 %v2074_v1 }
  0xc8   :  { %1596 = vmatpush3.msra.mxu0 %v2230_v42  ;;  %v112_v57 = vpop.permute.xlu1 %111 }
  0xc9   :  { %1635 = vmatprep.subr.mxu0 %v2074_v1  ;;  %vm122_vm10 = vcmp.eq.s32.totalorder %v112_v57, %v2277_v46 }
  0xca   :  { %1528 = vmatmul.mubr.msk.f32.gmra.mxu0 %vm122_vm10, %v2076_v49 }
  0xcb   :  { %1597 = vmatprep.mubr.msk.f32.mxu0 %vm2075_vm0, %v2074_v1 }
 0x10d   :  { %v375_v58 = vpop.f32.mrf.mxu1 }
 0x10f   :  { %v1564_v59 = vpop.f32.mrf.mxu1 }
 0x110   :  { %v1060_v59 = vld [vmem:[#allocation8 + $0x10] sm:$0xff] }
 0x169   :  { %v1517_v61 = vpop.f32.mrf.mxu0 }
 0x16a   :  { %v238_v62 = vadd.f32 %v1517_v61, %v2326_v60  ;;  %v1059_v61 = vld [vmem:[#allocation8 + $0x8] sm:$0xff] }
 0x16b   :  { %v232_v63 = vpop.f32.mrf.mxu0 }
 0x16c   :  { %v233_v0 = vadd.f32 %v2326_v60, %v232_v63 }
 0x16d   :  { %v1520_v2 = vpop.f32.mrf.mxu0 }
 0x16e   :  { %v379_v3 = vadd.f32 %v375_v58, %v233_v0  ;;  %v2331_v4 = vadd.f32 %v1520_v2, %v2326_v60 }
 0x16f   :  { %v242_v5 = vpop.f32.mrf.mxu0 }
 0x170   :  { %1940 = vtanh.f32 %v379_v3  ;;  %v2334_v6 = vadd.f32 %v2326_v60, %v242_v5  ;;  %v1260_v5 = vld [vmem:[%s2644_s6] ss:$0 sm:$0xff]  ;;  %s2077_s6 = smov [#allocation10]  }
 0x171   :  { %v1523_v8 = vpop.f32.mrf.mxu0  ;;  %s1225_s2 = sshll.u32 %s2077_s6, 4  ;;  %s1226_s2 = int_to_ptr.vmem [resolvable:$true] %s1225_s2 }
 0x172   :  { %v2337_v10 = vadd.f32 %v1523_v8, %v2326_v60  ;;  %s2020_s21 = scalar_lea.vmem %s1226_s2, 128  ;;  %p2025_p2 = scmp.lt.s32.totalorder %s1226_s2, %s1226_s2 }
 0x173   :  { %v252_v11 = vpop.f32.mrf.mxu0  ;;  %p2021_p1 = scmp.ne.s32.totalorder %s1226_s2, %s2020_s21  ;;  %p2026_p3 = scmp.lt.s32.totalorder %s2020_s21, %s2020_s21 }
 0x174   :  { %v2340_v12 = vadd.f32 %v2326_v60, %v252_v11 }
 0x175   :  { %v1526_v14 = vpop.f32.mrf.mxu0  ;;  %p2027_p4 = por %p2026_p3, %p2025_p2 }
 0x176   :  { %v2343_v16 = vadd.f32 %v1526_v14, %v2326_v60 }
 0x177   :  { %v262_v17 = vpop.f32.mrf.mxu0  ;;  %p2028_p5 = pnand %p2027_p4, %p2021_p1 }
 0x178   :  { %v2346_v18 = vadd.f32 %v2326_v60, %v262_v17 }
 0x17d   :  { %v2348_v20 = vpop.eup %1940 }
 0x17e   :  { %1598 = vmatmul.mubr.f32.vlgmr.msra.gmra.mxu0 %v2348_v20 }
 0x17f   :  { %1636 = vmatpush3.msra.mxu0 %v2155_v7  ;;  %1667 = vmatprep.mubr.msk.f32.mxu0 %vm2075_vm0, %v2074_v1 }
 0x180   :  { %1637 = vmatprep.subr.mxu0 %v2074_v1 }
 0x181   :  { %1638 = vmatpush3.msra.mxu0 %v2160_v9 }
 0x182   :  { %1639 = vmatprep.subr.mxu0 %v2074_v1 }
 0x183   :  { %1640 = vmatpush3.msra.mxu0 %v2170_v13 }
 0x184   :  { %1641 = vmatprep.subr.mxu0 %v2074_v1 }
 0x185   :  { %1642 = vmatpush3.msra.mxu0 %v2173_v15 }
 0x186   :  { %1643 = vmatprep.subr.mxu0 %v2074_v1 }
 0x187   :  { %1644 = vmatpush3.msra.mxu0 %v2184_v19 }
 0x188   :  { %1645 = vmatprep.subr.mxu0 %v2074_v1 }
 0x189   :  { %1646 = vmatpush3.msra.mxu0 %v2191_v22 }
 0x18a   :  { %1647 = vmatprep.subr.mxu0 %v2074_v1  ;;  %v1529_v21 = vpop.f32.mrf.mxu0 }
 0x18b   :  { %1648 = vmatpush3.msra.mxu0 %v2194_v24  ;;  %v2367_v23 = vadd.f32 %v1529_v21, %v2326_v60 }
 0x18c   :  { %1649 = vmatprep.subr.mxu0 %v2074_v1  ;;  %v2388_v25 = vpop.f32.mrf.mxu0 }
 0x18d   :  { %1650 = vmatpush3.msra.mxu0 %v2198_v26  ;;  %v273_v63 = vadd.f32 %v2326_v60, %v2388_v25 }
 0x18e   :  { %1651 = vmatprep.subr.mxu0 %v2074_v1 }
 0x18f   :  { %1652 = vmatpush3.msra.mxu0 %v2202_v28 }
 0x190   :  { %1653 = vmatprep.subr.mxu0 %v2074_v1 }
 0x191   :  { %1654 = vmatpush3.msra.mxu0 %v2206_v30 }
 0x192   :  { %1655 = vmatprep.subr.mxu0 %v2074_v1 }
 0x193   :  { %1656 = vmatpush3.msra.mxu0 %v2210_v32 }
 0x194   :  { %1657 = vmatprep.subr.mxu0 %v2074_v1 }
 0x195   :  { %1658 = vmatpush3.msra.mxu0 %v2214_v34 }
 0x196   :  { %1659 = vmatprep.subr.mxu0 %v2074_v1 }
 0x197   :  { %1660 = vmatpush3.msra.mxu0 %v2218_v36 }
 0x198   :  { %1661 = vmatprep.subr.mxu0 %v2074_v1 }
 0x199   :  { %1662 = vmatpush3.msra.mxu0 %v2222_v38 }
 0x19a   :  { %1663 = vmatprep.subr.mxu0 %v2074_v1 }
 0x19b   :  { %1664 = vmatpush3.msra.mxu0 %v2226_v40 }
 0x19c   :  { %1665 = vmatprep.subr.mxu0 %v2074_v1 }
 0x19d   :  { %1666 = vmatpush3.msra.mxu0 %v2230_v42 }
 0x19e   :  { %1705 = vmatprep.subr.mxu0 %v2074_v1 }
 0x23e   :  { %v449_v27 = vpop.f32.mrf.mxu0 }
 0x23f   :  { %v453_v29 = vadd.f32 %v449_v27, %v238_v62  ;;  %v1058_v62 = vld [vmem:[#allocation8] sm:$0xff] }
 0x240   :  { %v1599_v31 = vpop.f32.mrf.mxu0 }
 0x241   :  { %1942 = vtanh.f32 %v453_v29 }
 0x24e   :  { %v2390_v33 = vpop.eup %1942 }
 0x24f   :  { %1633 = vmatmul.mubr.f32.vlgmr.msra.gmra.mxu1 %v2390_v33 }
 0x250   :  { %1671 = vmatpush3.msra.mxu1 %v2155_v7  ;;  %1702 = vmatprep.mubr.msk.f32.mxu1 %vm2075_vm0, %v2074_v1 }
 0x251   :  { %1672 = vmatprep.subr.mxu1 %v2074_v1 }
 0x252   :  { %1673 = vmatpush3.msra.mxu1 %v2160_v9 }
 0x253   :  { %1674 = vmatprep.subr.mxu1 %v2074_v1 }
 0x254   :  { %1675 = vmatpush3.msra.mxu1 %v2170_v13 }
 0x255   :  { %1676 = vmatprep.subr.mxu1 %v2074_v1 }
 0x256   :  { %1677 = vmatpush3.msra.mxu1 %v2173_v15 }
 0x257   :  { %1678 = vmatprep.subr.mxu1 %v2074_v1 }
 0x258   :  { %1679 = vmatpush3.msra.mxu1 %v2184_v19 }
 0x259   :  { %1680 = vmatprep.subr.mxu1 %v2074_v1 }
 0x25a   :  { %1681 = vmatpush3.msra.mxu1 %v2191_v22 }
 0x25b   :  { %1682 = vmatprep.subr.mxu1 %v2074_v1 }
 0x25c   :  { %1683 = vmatpush3.msra.mxu1 %v2194_v24 }
 0x25d   :  { %1684 = vmatprep.subr.mxu1 %v2074_v1 }
 0x25e   :  { %1685 = vmatpush3.msra.mxu1 %v2198_v26 }
 0x25f   :  { %1686 = vmatprep.subr.mxu1 %v2074_v1 }
 0x260   :  { %1687 = vmatpush3.msra.mxu1 %v2202_v28 }
 0x261   :  { %1688 = vmatprep.subr.mxu1 %v2074_v1 }
 0x262   :  { %1689 = vmatpush3.msra.mxu1 %v2206_v30 }
 0x263   :  { %1690 = vmatprep.subr.mxu1 %v2074_v1 }
 0x264   :  { %1691 = vmatpush3.msra.mxu1 %v2210_v32 }
 0x265   :  { %1692 = vmatprep.subr.mxu1 %v2074_v1 }
 0x266   :  { %1693 = vmatpush3.msra.mxu1 %v2214_v34 }
 0x267   :  { %1694 = vmatprep.subr.mxu1 %v2074_v1 }
 0x268   :  { %1695 = vmatpush3.msra.mxu1 %v2218_v36 }
 0x269   :  { %1696 = vmatprep.subr.mxu1 %v2074_v1 }
 0x26a   :  { %1697 = vmatpush3.msra.mxu1 %v2222_v38 }
 0x26b   :  { %1698 = vmatprep.subr.mxu1 %v2074_v1 }
 0x26c   :  { %1699 = vmatpush3.msra.mxu1 %v2226_v40 }
 0x26d   :  { %1700 = vmatprep.subr.mxu1 %v2074_v1 }
 0x26e   :  { %1701 = vmatpush3.msra.mxu1 %v2230_v42 }
 0x26f   :  { %1740 = vmatprep.subr.mxu1 %v2074_v1 }
 0x30f   :  { %v523_v35 = vpop.f32.mrf.mxu1 }
 0x310   :  { %v527_v37 = vadd.f32 %v523_v35, %v2334_v6 }
 0x311   :  { %v1634_v39 = vpop.f32.mrf.mxu1 }
 0x312   :  { %1944 = vtanh.f32 %v527_v37 }
 0x31f   :  { %v2428_v41 = vpop.eup %1944 }
 0x320   :  { %1668 = vmatmul.mubr.f32.vlgmr.msra.gmra.mxu0 %v2428_v41 }
 0x321   :  { %1706 = vmatpush3.msra.mxu0 %v2155_v7  ;;  %1737 = vmatprep.mubr.msk.f32.mxu0 %vm2075_vm0, %v2074_v1 }
 0x322   :  { %1707 = vmatprep.subr.mxu0 %v2074_v1 }
 0x323   :  { %1708 = vmatpush3.msra.mxu0 %v2160_v9 }
 0x324   :  { %1709 = vmatprep.subr.mxu0 %v2074_v1 }
 0x325   :  { %1710 = vmatpush3.msra.mxu0 %v2170_v13 }
 0x326   :  { %1711 = vmatprep.subr.mxu0 %v2074_v1 }
 0x327   :  { %1712 = vmatpush3.msra.mxu0 %v2173_v15 }
 0x328   :  { %1713 = vmatprep.subr.mxu0 %v2074_v1 }
 0x329   :  { %1714 = vmatpush3.msra.mxu0 %v2184_v19 }
 0x32a   :  { %1715 = vmatprep.subr.mxu0 %v2074_v1 }
 0x32b   :  { %1716 = vmatpush3.msra.mxu0 %v2191_v22 }
 0x32c   :  { %1717 = vmatprep.subr.mxu0 %v2074_v1 }
 0x32d   :  { %1718 = vmatpush3.msra.mxu0 %v2194_v24 }
 0x32e   :  { %1719 = vmatprep.subr.mxu0 %v2074_v1 }
 0x32f   :  { %1720 = vmatpush3.msra.mxu0 %v2198_v26 }
 0x330   :  { %1721 = vmatprep.subr.mxu0 %v2074_v1 }
 0x331   :  { %1722 = vmatpush3.msra.mxu0 %v2202_v28 }
 0x332   :  { %1723 = vmatprep.subr.mxu0 %v2074_v1 }
 0x333   :  { %1724 = vmatpush3.msra.mxu0 %v2206_v30 }
 0x334   :  { %1725 = vmatprep.subr.mxu0 %v2074_v1 }
 0x335   :  { %1726 = vmatpush3.msra.mxu0 %v2210_v32 }
 0x336   :  { %1727 = vmatprep.subr.mxu0 %v2074_v1 }
 0x337   :  { %1728 = vmatpush3.msra.mxu0 %v2214_v34 }
 0x338   :  { %1729 = vmatprep.subr.mxu0 %v2074_v1 }
 0x339   :  { %1730 = vmatpush3.msra.mxu0 %v2218_v36 }
 0x33a   :  { %1731 = vmatprep.subr.mxu0 %v2074_v1 }
 0x33b   :  { %1732 = vmatpush3.msra.mxu0 %v2222_v38 }
 0x33c   :  { %1733 = vmatprep.subr.mxu0 %v2074_v1 }
 0x33d   :  { %1734 = vmatpush3.msra.mxu0 %v2226_v40 }
 0x33e   :  { %1735 = vmatprep.subr.mxu0 %v2074_v1 }
 0x33f   :  { %1736 = vmatpush3.msra.mxu0 %v2230_v42 }
 0x340   :  { %1775 = vmatprep.subr.mxu0 %v2074_v1 }
 0x3e0   :  { %v597_v43 = vpop.f32.mrf.mxu0 }
 0x3e1   :  { %v601_v44 = vadd.f32 %v597_v43, %v2331_v4 }
 0x3e2   :  { %v1669_v45 = vpop.f32.mrf.mxu0 }
 0x3e3   :  { %1946 = vtanh.f32 %v601_v44 }
 0x3f0   :  { %v2466_v46 = vpop.eup %1946 }
 0x3f1   :  { %1703 = vmatmul.mubr.f32.vlgmr.msra.gmra.mxu1 %v2466_v46 }
 0x3f2   :  { %1741 = vmatpush3.msra.mxu1 %v2155_v7  ;;  %1772 = vmatprep.mubr.msk.f32.mxu1 %vm2075_vm0, %v2074_v1 }
 0x3f3   :  { %1742 = vmatprep.subr.mxu1 %v2074_v1 }
 0x3f4   :  { %1743 = vmatpush3.msra.mxu1 %v2160_v9 }
 0x3f5   :  { %1744 = vmatprep.subr.mxu1 %v2074_v1 }
 0x3f6   :  { %1745 = vmatpush3.msra.mxu1 %v2170_v13 }
 0x3f7   :  { %1746 = vmatprep.subr.mxu1 %v2074_v1 }
 0x3f8   :  { %1747 = vmatpush3.msra.mxu1 %v2173_v15 }
 0x3f9   :  { %1748 = vmatprep.subr.mxu1 %v2074_v1 }
 0x3fa   :  { %1749 = vmatpush3.msra.mxu1 %v2184_v19 }
 0x3fb   :  { %1750 = vmatprep.subr.mxu1 %v2074_v1 }
 0x3fc   :  { %1751 = vmatpush3.msra.mxu1 %v2191_v22 }
 0x3fd   :  { %1752 = vmatprep.subr.mxu1 %v2074_v1 }
 0x3fe   :  { %1753 = vmatpush3.msra.mxu1 %v2194_v24 }
 0x3ff   :  { %1754 = vmatprep.subr.mxu1 %v2074_v1 }
 0x400   :  { %1755 = vmatpush3.msra.mxu1 %v2198_v26 }
 0x401   :  { %1756 = vmatprep.subr.mxu1 %v2074_v1 }
 0x402   :  { %1757 = vmatpush3.msra.mxu1 %v2202_v28 }
 0x403   :  { %1758 = vmatprep.subr.mxu1 %v2074_v1 }
 0x404   :  { %1759 = vmatpush3.msra.mxu1 %v2206_v30 }
 0x405   :  { %1760 = vmatprep.subr.mxu1 %v2074_v1 }
 0x406   :  { %1761 = vmatpush3.msra.mxu1 %v2210_v32 }
 0x407   :  { %1762 = vmatprep.subr.mxu1 %v2074_v1 }
 0x408   :  { %1763 = vmatpush3.msra.mxu1 %v2214_v34 }
 0x409   :  { %1764 = vmatprep.subr.mxu1 %v2074_v1 }
 0x40a   :  { %1765 = vmatpush3.msra.mxu1 %v2218_v36 }
 0x40b   :  { %1766 = vmatprep.subr.mxu1 %v2074_v1 }
 0x40c   :  { %1767 = vmatpush3.msra.mxu1 %v2222_v38 }
 0x40d   :  { %1768 = vmatprep.subr.mxu1 %v2074_v1 }
 0x40e   :  { %1769 = vmatpush3.msra.mxu1 %v2226_v40 }
 0x40f   :  { %1770 = vmatprep.subr.mxu1 %v2074_v1 }
 0x410   :  { %1771 = vmatpush3.msra.mxu1 %v2230_v42 }
 0x411   :  { %1810 = vmatprep.subr.mxu1 %v2074_v1 }
 0x4b1   :  { %v671_v47 = vpop.f32.mrf.mxu1 }
 0x4b2   :  { %v675_v48 = vadd.f32 %v671_v47, %v2340_v12 }
 0x4b3   :  { %v1704_v49 = vpop.f32.mrf.mxu1 }
 0x4b4   :  { %1948 = vtanh.f32 %v675_v48 }
 0x4c1   :  { %v2504_v50 = vpop.eup %1948 }
 0x4c2   :  { %1738 = vmatmul.mubr.f32.vlgmr.msra.gmra.mxu0 %v2504_v50 }
 0x4c3   :  { %1776 = vmatpush3.msra.mxu0 %v2155_v7  ;;  %1807 = vmatprep.mubr.msk.f32.mxu0 %vm2075_vm0, %v2074_v1 }
 0x4c4   :  { %1777 = vmatprep.subr.mxu0 %v2074_v1 }
 0x4c5   :  { %1778 = vmatpush3.msra.mxu0 %v2160_v9 }
 0x4c6   :  { %1779 = vmatprep.subr.mxu0 %v2074_v1 }
 0x4c7   :  { %1780 = vmatpush3.msra.mxu0 %v2170_v13 }
 0x4c8   :  { %1781 = vmatprep.subr.mxu0 %v2074_v1 }
 0x4c9   :  { %1782 = vmatpush3.msra.mxu0 %v2173_v15 }
 0x4ca   :  { %1783 = vmatprep.subr.mxu0 %v2074_v1 }
 0x4cb   :  { %1784 = vmatpush3.msra.mxu0 %v2184_v19 }
 0x4cc   :  { %1785 = vmatprep.subr.mxu0 %v2074_v1 }
 0x4cd   :  { %1786 = vmatpush3.msra.mxu0 %v2191_v22 }
 0x4ce   :  { %1787 = vmatprep.subr.mxu0 %v2074_v1 }
 0x4cf   :  { %1788 = vmatpush3.msra.mxu0 %v2194_v24 }
 0x4d0   :  { %1789 = vmatprep.subr.mxu0 %v2074_v1 }
 0x4d1   :  { %1790 = vmatpush3.msra.mxu0 %v2198_v26 }
 0x4d2   :  { %1791 = vmatprep.subr.mxu0 %v2074_v1 }
 0x4d3   :  { %1792 = vmatpush3.msra.mxu0 %v2202_v28 }
 0x4d4   :  { %1793 = vmatprep.subr.mxu0 %v2074_v1 }
 0x4d5   :  { %1794 = vmatpush3.msra.mxu0 %v2206_v30 }
 0x4d6   :  { %1795 = vmatprep.subr.mxu0 %v2074_v1 }
 0x4d7   :  { %1796 = vmatpush3.msra.mxu0 %v2210_v32 }
 0x4d8   :  { %1797 = vmatprep.subr.mxu0 %v2074_v1 }
 0x4d9   :  { %1798 = vmatpush3.msra.mxu0 %v2214_v34 }
 0x4da   :  { %1799 = vmatprep.subr.mxu0 %v2074_v1 }
 0x4db   :  { %1800 = vmatpush3.msra.mxu0 %v2218_v36 }
 0x4dc   :  { %1801 = vmatprep.subr.mxu0 %v2074_v1 }
 0x4dd   :  { %1802 = vmatpush3.msra.mxu0 %v2222_v38 }
 0x4de   :  { %1803 = vmatprep.subr.mxu0 %v2074_v1 }
 0x4df   :  { %1804 = vmatpush3.msra.mxu0 %v2226_v40 }
 0x4e0   :  { %1805 = vmatprep.subr.mxu0 %v2074_v1 }
 0x4e1   :  { %1806 = vmatpush3.msra.mxu0 %v2230_v42 }
 0x4e2   :  { %1845 = vmatprep.subr.mxu0 %v2074_v1 }
 0x582   :  { %v745_v51 = vpop.f32.mrf.mxu0 }
 0x583   :  { %v749_v52 = vadd.f32 %v745_v51, %v2337_v10 }
 0x584   :  { %v1739_v53 = vpop.f32.mrf.mxu0 }
 0x585   :  { %1950 = vtanh.f32 %v749_v52 }
 0x592   :  { %v2542_v54 = vpop.eup %1950 }
 0x593   :  { %1773 = vmatmul.mubr.f32.vlgmr.msra.gmra.mxu1 %v2542_v54 }
 0x594   :  { %1811 = vmatpush3.msra.mxu1 %v2155_v7  ;;  %1842 = vmatprep.mubr.msk.f32.mxu1 %vm2075_vm0, %v2074_v1 }
 0x595   :  { %1812 = vmatprep.subr.mxu1 %v2074_v1 }
 0x596   :  { %1813 = vmatpush3.msra.mxu1 %v2160_v9 }
 0x597   :  { %1814 = vmatprep.subr.mxu1 %v2074_v1 }
 0x598   :  { %1815 = vmatpush3.msra.mxu1 %v2170_v13 }
 0x599   :  { %1816 = vmatprep.subr.mxu1 %v2074_v1 }
 0x59a   :  { %1817 = vmatpush3.msra.mxu1 %v2173_v15 }
 0x59b   :  { %1818 = vmatprep.subr.mxu1 %v2074_v1 }
 0x59c   :  { %1819 = vmatpush3.msra.mxu1 %v2184_v19 }
 0x59d   :  { %1820 = vmatprep.subr.mxu1 %v2074_v1 }
 0x59e   :  { %1821 = vmatpush3.msra.mxu1 %v2191_v22 }
 0x59f   :  { %1822 = vmatprep.subr.mxu1 %v2074_v1 }
 0x5a0   :  { %1823 = vmatpush3.msra.mxu1 %v2194_v24 }
 0x5a1   :  { %1824 = vmatprep.subr.mxu1 %v2074_v1 }
 0x5a2   :  { %1825 = vmatpush3.msra.mxu1 %v2198_v26 }
 0x5a3   :  { %1826 = vmatprep.subr.mxu1 %v2074_v1 }
 0x5a4   :  { %1827 = vmatpush3.msra.mxu1 %v2202_v28 }
 0x5a5   :  { %1828 = vmatprep.subr.mxu1 %v2074_v1 }
 0x5a6   :  { %1829 = vmatpush3.msra.mxu1 %v2206_v30 }
 0x5a7   :  { %1830 = vmatprep.subr.mxu1 %v2074_v1 }
 0x5a8   :  { %1831 = vmatpush3.msra.mxu1 %v2210_v32 }
 0x5a9   :  { %1832 = vmatprep.subr.mxu1 %v2074_v1 }
 0x5aa   :  { %1833 = vmatpush3.msra.mxu1 %v2214_v34 }
 0x5ab   :  { %1834 = vmatprep.subr.mxu1 %v2074_v1 }
 0x5ac   :  { %1835 = vmatpush3.msra.mxu1 %v2218_v36 }
 0x5ad   :  { %1836 = vmatprep.subr.mxu1 %v2074_v1 }
 0x5ae   :  { %1837 = vmatpush3.msra.mxu1 %v2222_v38 }
 0x5af   :  { %1838 = vmatprep.subr.mxu1 %v2074_v1 }
 0x5b0   :  { %1839 = vmatpush3.msra.mxu1 %v2226_v40 }
 0x5b1   :  { %1840 = vmatprep.subr.mxu1 %v2074_v1 }
 0x5b2   :  { %1841 = vmatpush3.msra.mxu1 %v2230_v42 }
 0x653   :  { %v819_v55 = vpop.f32.mrf.mxu1 }
 0x654   :  { %v823_v56 = vadd.f32 %v819_v55, %v2346_v18 }
 0x655   :  { %v1774_v57 = vpop.f32.mrf.mxu1 }
 0x656   :  { %1952 = vtanh.f32 %v823_v56 }
 0x663   :  { %v2579_v58 = vpop.eup %1952 }
 0x664   :  { %1808 = vmatmul.mubr.f32.vlgmr.msra.gmra.mxu0 %v2579_v58 }
 0x665   :  { %1846 = vmatpush3.msra.mxu0 %v2155_v7  ;;  %1877 = vmatprep.mubr.msk.f32.mxu0 %vm2075_vm0, %v2074_v1  ;;  %v1073_v7 = vld [vmem:[#allocation8 + $0x78] sm:$0xff] }
 0x666   :  { %1847 = vmatprep.subr.mxu0 %v2074_v1  ;;  %1880 = vmatprep.subr.mxu1 %v1073_v7 }
 0x667   :  { %1848 = vmatpush3.msra.mxu0 %v2160_v9 }
 0x668   :  { %1849 = vmatprep.subr.mxu0 %v2074_v1 }
 0x669   :  { %1850 = vmatpush3.msra.mxu0 %v2170_v13 }
 0x66a   :  { %1851 = vmatprep.subr.mxu0 %v2074_v1 }
 0x66b   :  { %1852 = vmatpush3.msra.mxu0 %v2173_v15 }
 0x66c   :  { %1853 = vmatprep.subr.mxu0 %v2074_v1 }
 0x66d   :  { %1854 = vmatpush3.msra.mxu0 %v2184_v19 }
 0x66e   :  { %1855 = vmatprep.subr.mxu0 %v2074_v1 }
 0x66f   :  { %1856 = vmatpush3.msra.mxu0 %v2191_v22  ;;  %v1072_v22 = vld [vmem:[#allocation8 + $0x70] sm:$0xff] }
 0x670   :  { %1857 = vmatprep.subr.mxu0 %v2074_v1 }
 0x671   :  { %1858 = vmatpush3.msra.mxu0 %v2194_v24  ;;  %v1071_v24 = vld [vmem:[#allocation8 + $0x68] sm:$0xff] }
 0x672   :  { %1859 = vmatprep.subr.mxu0 %v2074_v1 }
 0x673   :  { %1860 = vmatpush3.msra.mxu0 %v2198_v26  ;;  %v1070_v26 = vld [vmem:[#allocation8 + $0x60] sm:$0xff] }
 0x674   :  { %1861 = vmatprep.subr.mxu0 %v2074_v1 }
 0x675   :  { %1862 = vmatpush3.msra.mxu0 %v2202_v28  ;;  %v1068_v28 = vld [vmem:[#allocation8 + $0x50] sm:$0xff] }
 0x676   :  { %1863 = vmatprep.subr.mxu0 %v2074_v1 }
 0x677   :  { %1864 = vmatpush3.msra.mxu0 %v2206_v30  ;;  %v1067_v30 = vld [vmem:[#allocation8 + $0x48] sm:$0xff] }
 0x678   :  { %1865 = vmatprep.subr.mxu0 %v2074_v1 }
 0x679   :  { %1866 = vmatpush3.msra.mxu0 %v2210_v32  ;;  %v1066_v32 = vld [vmem:[#allocation8 + $0x40] sm:$0xff] }
 0x67a   :  { %1867 = vmatprep.subr.mxu0 %v2074_v1 }
 0x67b   :  { %1868 = vmatpush3.msra.mxu0 %v2214_v34  ;;  %v1065_v34 = vld [vmem:[#allocation8 + $0x38] sm:$0xff] }
 0x67c   :  { %1869 = vmatprep.subr.mxu0 %v2074_v1 }
 0x67d   :  { %1870 = vmatpush3.msra.mxu0 %v2218_v36  ;;  %v1064_v36 = vld [vmem:[#allocation8 + $0x30] sm:$0xff] }
 0x67e   :  { %1871 = vmatprep.subr.mxu0 %v2074_v1 }
 0x67f   :  { %1872 = vmatpush3.msra.mxu0 %v2222_v38  ;;  %v1063_v38 = vld [vmem:[#allocation8 + $0x28] sm:$0xff] }
 0x680   :  { %1873 = vmatprep.subr.mxu0 %v2074_v1 }
 0x681   :  { %1874 = vmatpush3.msra.mxu0 %v2226_v40  ;;  %v1062_v40 = vld [vmem:[#allocation8 + $0x20] sm:$0xff] }
 0x682   :  { %1875 = vmatprep.subr.mxu0 %v2074_v1  ;;  %v1069_v1 = vld [vmem:[#allocation8 + $0x58] sm:$0xff] }
 0x683   :  { %1876 = vmatpush3.msra.mxu0 %v2230_v42  ;;  %v1061_v42 = vld [vmem:[#allocation8 + $0x18] sm:$0xff] }
 0x724   :  { %v893_v9 = vpop.f32.mrf.mxu0 }
 0x725   :  { %v897_v13 = vadd.f32 %v893_v9, %v2343_v16 }
 0x726   :  { %v1809_v15 = vpop.f32.mrf.mxu0 }
 0x727   :  { %1954 = vtanh.f32 %v897_v13 }
 0x734   :  { %v1955_v19 = vpop.eup %1954 }
 0x735   :  { %1843 = vmatmul.mubr.f32.vlgmr.msra.gmra.mxu1 %v1955_v19 }
 0x736   :  { %1881 = vmatpush3.msra.mxu1 %v1073_v7  ;;  %1912 = vmatprep.mubr.f32.mxu1 %v2348_v20 }
 0x737   :  { %1882 = vmatprep.subr.mxu1 %v1072_v22 }
 0x738   :  { %1883 = vmatpush3.msra.mxu1 %v1072_v22 }
 0x739   :  { %1884 = vmatprep.subr.mxu1 %v1071_v24 }
 0x73a   :  { %1885 = vmatpush3.msra.mxu1 %v1071_v24 }
 0x73b   :  { %1886 = vmatprep.subr.mxu1 %v1070_v26 }
 0x73c   :  { %1887 = vmatpush3.msra.mxu1 %v1070_v26 }
 0x73d   :  { %1888 = vmatprep.subr.mxu1 %v1069_v1 }
 0x73e   :  { %1889 = vmatpush3.msra.mxu1 %v1069_v1 }
 0x73f   :  { %1890 = vmatprep.subr.mxu1 %v1068_v28 }
 0x740   :  { %1891 = vmatpush3.msra.mxu1 %v1068_v28 }
 0x741   :  { %1892 = vmatprep.subr.mxu1 %v1067_v30 }
 0x742   :  { %1893 = vmatpush3.msra.mxu1 %v1067_v30 }
 0x743   :  { %1894 = vmatprep.subr.mxu1 %v1066_v32 }
 0x744   :  { %1895 = vmatpush3.msra.mxu1 %v1066_v32 }
 0x745   :  { %1896 = vmatprep.subr.mxu1 %v1065_v34 }
 0x746   :  { %1897 = vmatpush3.msra.mxu1 %v1065_v34 }
 0x747   :  { %1898 = vmatprep.subr.mxu1 %v1064_v36 }
 0x748   :  { %1899 = vmatpush3.msra.mxu1 %v1064_v36 }
 0x749   :  { %1900 = vmatprep.subr.mxu1 %v1063_v38 }
 0x74a   :  { %1901 = vmatpush3.msra.mxu1 %v1063_v38 }
 0x74b   :  { %1902 = vmatprep.subr.mxu1 %v1062_v40 }
 0x74c   :  { %1903 = vmatpush3.msra.mxu1 %v1062_v40 }
 0x74d   :  { %1904 = vmatprep.subr.mxu1 %v1061_v42 }
 0x74e   :  { %1905 = vmatpush3.msra.mxu1 %v1061_v42 }
 0x74f   :  { %1906 = vmatprep.subr.mxu1 %v1060_v59 }
 0x750   :  { %1907 = vmatpush3.msra.mxu1 %v1060_v59 }
 0x751   :  { %1908 = vmatprep.subr.mxu1 %v1059_v61 }
 0x752   :  { %1909 = vmatpush3.msra.mxu1 %v1059_v61 }
 0x753   :  { %1910 = vmatprep.subr.mxu1 %v1058_v62 }
 0x754   :  { %1911 = vmatpush3.msra.mxu1 %v1058_v62 }
 0x755   :  { %1913 = vmatmul.mubr.f32.vlgmr.msra.gmra.mxu1 %v2390_v33 }
 0x756   :  { %1915 = vmatprep.mubr.f32.mxu1 %v2428_v41 }
 0x759   :  { %1916 = vmatmul.mubr.f32.gmra.mxu1 %v2466_v46 }
 0x75a   :  { %1918 = vmatprep.mubr.f32.mxu1 %v2504_v50 }
 0x75d   :  { %1919 = vmatmul.mubr.f32.gmra.mxu1 %v2542_v54 }
 0x75e   :  { %1921 = vmatprep.mubr.f32.mxu1 %v2579_v58 }
 0x761   :  { %1922 = vmatmul.mubr.f32.gmra.mxu1 %v1955_v19 }
 0x7f5   :  { %v967_v0 = vpop.f32.mrf.mxu1 }
 0x7f6   :  { %v971_v2 = vadd.f32 %v967_v0, %v273_v63 }
 0x7f7   :  { %v1844_v3 = vpop.f32.mrf.mxu1 }
 0x7f8   :  { %1956 = vtanh.f32 %v971_v2 }
 0x805   :  { %v1957_v4 = vpop.eup %1956 }
 0x806   :  { %1878 = vmatmul.mubr.f32.vlgmr.msra.gmra.mxu0 %v1957_v4  ;;  %1924 = vmatprep.mubr.f32.mxu1 %v1957_v4 }
 0x815   :  { %v1914_v6 = vpop.f32.mrf.mxu1 }
 0x816   :  { %v1153_v8 = vadd.f32 %v1914_v6, %v1260_v5 }
 0x817   :  { %v1147_v10 = vpop.f32.mrf.mxu1 }
 0x818   :  { %1197 = vst [vmem:[#allocation9 + $0x8] sm:$0xff] %v1153_v8  ;;  %v1148_v11 = vadd.f32 %v1260_v5, %v1147_v10 }
 0x819   :  { %v1917_v12 = vpop.f32.mrf.mxu1 }
 0x81a   :  { %1196 = vst [vmem:[#allocation9] sm:$0xff] %v1148_v11  ;;  %v1163_v14 = vadd.f32 %v1917_v12, %v1260_v5 }
 0x81b   :  { %v1157_v60 = vpop.f32.mrf.mxu1 }
 0x81c   :  { %1199 = vst [vmem:[#allocation9 + $0x18] sm:$0xff] %v1163_v14  ;;  %v1158_v16 = vadd.f32 %v1260_v5, %v1157_v60 }
 0x81d   :  { %v1920_v17 = vpop.f32.mrf.mxu1 }
 0x81e   :  { %1198 = vst [vmem:[#allocation9 + $0x10] sm:$0xff] %v1158_v16  ;;  %v1173_v18 = vadd.f32 %v1920_v17, %v1260_v5 }
 0x81f   :  { %v1167_v20 = vpop.f32.mrf.mxu1 }
 0x820   :  { %1201 = vst [vmem:[#allocation9 + $0x28] sm:$0xff] %v1173_v18  ;;  %v1168_v21 = vadd.f32 %v1260_v5, %v1167_v20 }
 0x821   :  { %v1923_v25 = vpop.f32.mrf.mxu1 }
 0x822   :  { %1200 = vst [vmem:[#allocation9 + $0x20] sm:$0xff] %v1168_v21  ;;  %v1183_v27 = vadd.f32 %v1923_v25, %v1260_v5 }
 0x823   :  { %v1177_v29 = vpop.f32.mrf.mxu1 }
 0x824   :  { %1203 = vst [vmem:[#allocation9 + $0x38] sm:$0xff] %v1183_v27  ;;  %v1178_v31 = vadd.f32 %v1260_v5, %v1177_v29 }
 0x826   :  { %1202 = vst [vmem:[#allocation9 + $0x30] sm:$0xff] %v1178_v31 }
 0x8c6   :  { %v1041_v33 = vpop.f32.mrf.mxu0 }
 0x8c7   :  { %v1045_v35 = vadd.f32 %v1041_v33, %v2367_v23 }
 0x8c8   :  { %v1879_v37 = vpop.f32.mrf.mxu0 }
 0x8c9   :  { %1958 = vtanh.f32 %v1045_v35 }
 0x8d6   :  { %v1959_v39 = vpop.eup %1958 }
 0x8d7   :  { %1206 = vst [vmem:[#allocation10] sm:$0xff] %v1959_v39  ;;  %1925 = vmatmul.mubr.f32.gmra.mxu1 %v1959_v39 }
 0x8d8   :  { %2031 = shalt.err (!%p2028_p5)
}
 0x8d9   :  { %1228 = dma.vmem_to_hbm [thread:$0]  %s1226_s2, 128, %s2646_s8, [#allocation11]  }
 0x8da   :  { %s2078_s5 = smov [#allocation9]  }
 0x8db   :  { %s1212_s24 = sshll.u32 %s2078_s5, 4  ;;  %s1213_s24 = int_to_ptr.vmem [resolvable:$true] %s1212_s24 }
 0x8dc   :  { %s2040_s25 = scalar_lea.vmem %s1213_s24, 1280  ;;  %p2045_p7 = scmp.lt.s32.totalorder %s1213_s24, %s1213_s24 }
 0x8dd   :  { %p2041_p6 = scmp.ne.s32.totalorder %s1213_s24, %s2040_s25  ;;  %p2046_p8 = scmp.lt.s32.totalorder %s2040_s25, %s2040_s25 }
 0x8df   :  { %p2047_p9 = por %p2046_p8, %p2045_p7 }
 0x8e1   :  { %p2048_p10 = pnand %p2047_p9, %p2041_p6 }
 0x997   :  { %v1926_v23 = vpop.f32.mrf.mxu1 }
 0x998   :  { %v1193_v41 = vadd.f32 %v1926_v23, %v1260_v5 }
 0x999   :  { %v1187_v43 = vpop.f32.mrf.mxu1 }
 0x99a   :  { %1205 = vst [vmem:[#allocation9 + $0x48] sm:$0xff] %v1193_v41  ;;  %v1188_v44 = vadd.f32 %v1260_v5, %v1187_v43 }
 0x99c   :  { %1204 = vst [vmem:[#allocation9 + $0x40] sm:$0xff] %v1188_v44 }
 0x99d   :  { %2051 = shalt.err (!%p2048_p10)
}
 0x99e   :  { %1218 = dma.vmem_to_hbm [thread:$0]  %s1213_s24, 1280, %s2645_s7, [#allocation5], %s2070_s10, %s2070_s10, %s2071_s11  }
 0x99f   :  { %2064 = dma.done.wait [#allocation5], 1280  }
 0x9a0   :  { %2065 = vsyncadd [#allocation5], 4294966016 }
 0x9a1   :  { %2066 = dma.done.wait [#allocation11], 128  }
 0x9a2   :  { %2067 = vsyncadd [#allocation11], 4294967168 }
 0x9a3   :  { %1235 = vsyncpa [#allocation4], 1 }
 0x9a4   :  { %1236 = vsyncpa [#allocation7], 1 }
 0x9a5   :  { %1237 = vsyncpa [#allocation5], 1 }
 0x9a6   :  { %1238 = vsyncpa [#allocation11], 1 }

</bundles_post_ra>
